<compile_context>
chip_gen: v5e
topology: v5e:2x2
jax: 0.10.0
libtpu: 0.0.40
codegen_flags: <defaults>
</compile_context>

<pallas_src>
import functools

import jax
import jax.numpy as jnp
from jax.experimental import pallas as pl
from jax.experimental.pallas import tpu as pltpu


def _apply_activation(x, activation):
    if activation == "relu":
        return jnp.maximum(x, 0.0)
    if activation == "lrelu":
        return jnp.where(x > 0, x, 0.2 * x)
    if activation == "tanh":
        return jnp.tanh(x)
    if activation == "selu":
        scale = 1.0507009873554805
        alpha = 1.6732632423543772
        return scale * jnp.where(x > 0, x, alpha * (jnp.exp(x) - 1.0))
    if activation == "none":
        return x
    # TODO(synk): 'prelu' has a learnable slope parameter; not wired in here.
    raise ValueError(f"Unsupported activation: {activation}")


def linear_block_kernel(x_ref, wt_ref, b_ref, o_ref, acc_ref, *, activation):
    """One (tm, tn) output tile; accumulates over the K grid axis."""
    k = pl.program_id(2)

    @pl.when(k == 0)
    def _():
        acc_ref[...] = jnp.zeros_like(acc_ref)

    acc_ref[...] += jnp.dot(
        x_ref[...], wt_ref[...], preferred_element_type=jnp.float32
    )

    @pl.when(k == pl.num_programs(2) - 1)
    def _():
        out = acc_ref[...] + b_ref[...]            # (1, tn) broadcasts over rows
        out = _apply_activation(out, activation)   # fused epilogue, f32
        o_ref[...] = out.astype(o_ref.dtype)


def _round_up(x, m):
    return (x + m - 1) // m * m


def linear_block_forward(x, weight, bias, *, norm="none", activation="relu",
                         tm=None, tn=None, tk=None):
    """x: [M, K]; weight: [N, K] (torch nn.Linear layout); bias: [N] -> [M, N]."""
    if norm != "none":
        # TODO(synk): 'bn'/'in'/'ln'/'sn' norm branches not implemented in-kernel.
        raise NotImplementedError(f"norm='{norm}' not implemented")

    M, K = x.shape
    N, K2 = weight.shape
    assert K == K2 and bias.shape == (N,)

    # Tile selection: lane-dense (multiple-of-128) last dims, sublane-aligned rows.
    tm = tm or min(128, _round_up(M, 8))
    tn = tn or min(256, _round_up(N, 128))
    tk = tk or min(512, _round_up(K, 128))

    Mp = _round_up(M, tm)
    Np = _round_up(N, tn)
    Kp = _round_up(K, tk)

    # Zero-pad to tile multiples (padded K columns contribute 0 to the matmul).
    xp = jnp.pad(x, ((0, Mp - M), (0, Kp - K)))
    wt = jnp.pad(weight.T, ((0, Kp - K), (0, Np - N)))
    bp = jnp.pad(bias.reshape(1, -1), ((0, 0), (0, Np - N)))

    grid = (Mp // tm, Np // tn, Kp // tk)

    out = pl.pallas_call(
        functools.partial(linear_block_kernel, activation=activation),
        out_shape=jax.ShapeDtypeStruct((Mp, Np), x.dtype),
        grid_spec=pltpu.PrefetchScalarGridSpec(
            num_scalar_prefetch=0,
            grid=grid,
            in_specs=[
                pl.BlockSpec((tm, tk), lambda i, j, k: (i, k)),   # x tile
                pl.BlockSpec((tk, tn), lambda i, j, k: (k, j)),   # W.T tile
                pl.BlockSpec((1, tn), lambda i, j, k: (0, j)),    # bias row
            ],
            out_specs=pl.BlockSpec((tm, tn), lambda i, j, k: (i, j)),
            scratch_shapes=[pltpu.VMEM((tm, tn), jnp.float32)],
        ),
        compiler_params=pltpu.CompilerParams(
            dimension_semantics=("parallel", "parallel", "arbitrary"),
            vmem_limit_bytes=64 * 1024 * 1024,
        ),
    )(xp, wt, bp)

    return out[:M, :N]


if __name__ == "__main__":
    # Small demo shapes consistent with LinearBlock(input_dim, output_dim).
    batch = 8
    input_dim = 512
    output_dim = 256

    key = jax.random.PRNGKey(0)
    k_x, k_w, k_b = jax.random.split(key, 3)

    x = jax.random.normal(k_x, (batch, input_dim), dtype=jnp.float32)
    # Same roles as nn.Linear.weight ([out, in]) and nn.Linear.bias ([out]).
    weight = jax.random.normal(k_w, (output_dim, input_dim), dtype=jnp.float32) * 0.05
    bias = jax.random.normal(k_b, (output_dim,), dtype=jnp.float32) * 0.05

    out = linear_block_forward(x, weight, bias, norm="none", activation="relu")
    out = jax.block_until_ready(out)

    # Reference check against plain JAX: relu(x @ W.T + b)
    ref = jnp.maximum(jnp.dot(x, weight.T) + bias[None, :], 0.0)
    assert out.shape == (batch, output_dim)
    assert jnp.allclose(out, ref, atol=1e-4, rtol=1e-4)

    print("KERNEL_OK")
</pallas_src>

<mosaic_0001>
module attributes {stable_mosaic.version = 11 : i64} {
  func.func @linear_block_kernel(%arg0: i32, %arg1: i32, %arg2: i32, %arg3: memref<8x512xf32, #tpu.memory_space<vmem>>, %arg4: memref<512x256xf32, #tpu.memory_space<vmem>>, %arg5: memref<1x256xf32, #tpu.memory_space<vmem>>, %arg6: memref<8x256xf32, #tpu.memory_space<vmem>>, %arg7: memref<8x256xf32, #tpu.memory_space<vmem>>) attributes {dimension_semantics = [#tpu.dimension_semantics<parallel>, #tpu.dimension_semantics<parallel>, #tpu.dimension_semantics<arbitrary>], iteration_bounds = array<i64: 1, 1, 1>, scalar_prefetch = 0 : i64, scratch_operands = 1 : i64, tpu.core_type = #tpu.core_type<tc>, window_params = [{transform_indices = @transform_0, window_bounds = array<i64: 8, 512>}, {transform_indices = @transform_1, window_bounds = array<i64: 512, 256>}, {transform_indices = @transform_2, window_bounds = array<i64: 1, 256>}, {transform_indices = @transform_3, window_bounds = array<i64: 8, 256>}]} {
    %c0_i32 = arith.constant 0 : i32
    %0 = arith.cmpi eq, %arg2, %c0_i32 : i32
    %1 = arith.extui %0 : i1 to i32
    %c0_i32_0 = arith.constant 0 : i32
    %2 = arith.cmpi ne, %1, %c0_i32_0 : i32
    scf.if %2 {
      %cst_10 = arith.constant 0.000000e+00 : f32
      %12 = vector.broadcast %cst_10 : f32 to vector<8x256xf32>
      %c0_11 = arith.constant 0 : index
      %c0_12 = arith.constant 0 : index
      %13 = vector.load %arg7[%c0_11, %c0_12] : memref<8x256xf32, #tpu.memory_space<vmem>>, vector<8x256xf32>
      tpu.vector_store %arg7[%c0_11, %c0_12], %12 {strides = array<i32>} : memref<8x256xf32, #tpu.memory_space<vmem>>, vector<8x256xf32>,
    } else {
    }
    %c0 = arith.constant 0 : index
    %c0_1 = arith.constant 0 : index
    %3 = vector.load %arg7[%c0, %c0_1] : memref<8x256xf32, #tpu.memory_space<vmem>>, vector<8x256xf32>
    %c0_2 = arith.constant 0 : index
    %c0_3 = arith.constant 0 : index
    %4 = vector.load %arg3[%c0_2, %c0_3] : memref<8x512xf32, #tpu.memory_space<vmem>>, vector<8x512xf32>
    %c0_4 = arith.constant 0 : index
    %c0_5 = arith.constant 0 : index
    %5 = vector.load %arg4[%c0_4, %c0_5] : memref<512x256xf32, #tpu.memory_space<vmem>>, vector<512x256xf32>
    %cst = arith.constant dense<0.000000e+00> : vector<8x256xf32>
    %6 = tpu.matmul %4, %5, %cst {dimension_numbers = #tpu.dot_dimension_numbers<[1], [0], [0], [1], [0, 0, 1, 1], [], []>} : vector<8x512xf32>, vector<512x256xf32>, vector<8x256xf32> -> vector<8x256xf32>
    %7 = arith.addf %3, %6 : vector<8x256xf32>
    %c0_6 = arith.constant 0 : index
    %c0_7 = arith.constant 0 : index
    %8 = vector.load %arg7[%c0_6, %c0_7] : memref<8x256xf32, #tpu.memory_space<vmem>>, vector<8x256xf32>
    tpu.vector_store %arg7[%c0_6, %c0_7], %7 {strides = array<i32>} : memref<8x256xf32, #tpu.memory_space<vmem>>, vector<8x256xf32>,
    %c0_i32_8 = arith.constant 0 : i32
    %9 = arith.cmpi eq, %arg2, %c0_i32_8 : i32
    %10 = arith.extui %9 : i1 to i32
    %c0_i32_9 = arith.constant 0 : i32
    %11 = arith.cmpi ne, %10, %c0_i32_9 : i32
    scf.if %11 {
      %c0_10 = arith.constant 0 : index
      %c0_11 = arith.constant 0 : index
      %12 = vector.load %arg7[%c0_10, %c0_11] : memref<8x256xf32, #tpu.memory_space<vmem>>, vector<8x256xf32>
      %c0_12 = arith.constant 0 : index
      %c0_13 = arith.constant 0 : index
      %13 = vector.load %arg5[%c0_12, %c0_13] : memref<1x256xf32, #tpu.memory_space<vmem>>, vector<1x256xf32>
      %14 = vector.broadcast %13 : vector<1x256xf32> to vector<8x256xf32>
      %15 = arith.addf %12, %14 : vector<8x256xf32>
      %cst_14 = arith.constant 0.000000e+00 : f32
      %16 = vector.broadcast %cst_14 : f32 to vector<8x256xf32>
      %17 = arith.maximumf %15, %16 : vector<8x256xf32>
      %c0_15 = arith.constant 0 : index
      %c0_16 = arith.constant 0 : index
      %18 = vector.load %arg6[%c0_15, %c0_16] : memref<8x256xf32, #tpu.memory_space<vmem>>, vector<8x256xf32>
      tpu.vector_store %arg6[%c0_15, %c0_16], %17 {strides = array<i32>} : memref<8x256xf32, #tpu.memory_space<vmem>>, vector<8x256xf32>,
    } else {
    }
    return
  }
  func.func @transform_0(%arg0: i32, %arg1: i32, %arg2: i32) -> (i32, i32) {
    %c0_i32 = arith.constant 0 : i32
    return %arg0, %arg2 : i32, i32
  }
  func.func @transform_1(%arg0: i32, %arg1: i32, %arg2: i32) -> (i32, i32) {
    %c0_i32 = arith.constant 0 : i32
    return %arg2, %arg1 : i32, i32
  }
  func.func @transform_2(%arg0: i32, %arg1: i32, %arg2: i32) -> (i32, i32) {
    %c0_i32 = arith.constant 0 : i32
    %c0_i32_0 = arith.constant 0 : i32
    return %c0_i32, %arg1 : i32, i32
  }
  func.func @transform_3(%arg0: i32, %arg1: i32, %arg2: i32) -> (i32, i32) {
    %c0_i32 = arith.constant 0 : i32
    return %arg0, %arg1 : i32, i32
  }
}

</mosaic_0001>

<bundles_post_ra>
// kernel: tpu_custom_call.1
= control target key start
LH: loop header
LB: loop body
LE: loop exit
PB: predicated region body
PF: predicated region fallthrough
CT: control target
= control target key end

     0   :  { %8 = vsyncpa [#allocation4], 0  ;;  %s543_s0 = inlined_call_operand.hbm [shape: f32[8,512], index: 0, kind: input, shape index: {}]   ;;  %s544_s1 = inlined_call_operand.hbm [shape: f32[512,256], index: 1, kind: input, shape index: {}]   ;;  %s545_s2 = inlined_call_operand.hbm [shape: f32[1,256], index: 2, kind: input, shape index: {}]   ;;  %s546_s3 = inlined_call_operand.hbm [shape: f32[8,256], index: 3, kind: output, shape index: {}]  }
   0x1   :  { %9 = vsyncpa [#allocation7], 0  ;;  %s26_s14 = sshll.u32 %s544_s1, 4  ;;  %s27_s14 = int_to_ptr.hbm [resolvable:$true] %s26_s14 }
   0x2   :  { %10 = vsyncpa [#allocation5], 0  ;;  %s505_s15 = smov [#allocation6]   ;;  %s16_s19 = sshll.u32 %s543_s0, 4  ;;  %s17_s19 = int_to_ptr.hbm [resolvable:$true] %s16_s19 }
   0x3   :  { %s28_s16 = sshll.u32 %s505_s15, 4  ;;  %s506_s20 = smov 256   ;;  %s29_s16 = int_to_ptr.vmem [resolvable:$true] %s28_s16 }
   0x4   :  { %s507_s21 = smov 16   ;;  %s508_s22 = smov [#allocation3]  }
   0x5   :  { %34 = dma.hbm_to_vmem [thread:$0]  %s27_s14, 16384, %s29_s16, [#allocation7], %s506_s20, %s506_s20, %s507_s21  }
   0x6   :  { %s18_s23 = sshll.u32 %s508_s22, 4  ;;  %s40_s26 = sshll.u32 %s545_s2, 4  ;;  %s19_s23 = int_to_ptr.vmem [resolvable:$true] %s18_s23  ;;  %s41_s26 = int_to_ptr.hbm [resolvable:$true] %s40_s26 }
   0x7   :  { %21 = dma.hbm_to_vmem [thread:$0]  %s17_s19, 512, %s19_s23, [#allocation4]  }
   0x8   :  { %s509_s1 = smov [#allocation8]  }
   0x9   :  { %s42_s27 = sshll.u32 %s509_s1, 4  ;;  %s43_s27 = int_to_ptr.vmem [resolvable:$true] %s42_s27 }
   0xa   :  { %45 = dma.hbm_to_vmem [thread:$0]  %s41_s26, 32, %s43_s27, [#allocation7]  }
   0xb   :  { %499 = dma.done.wait [#allocation4], 512  }
   0xc   :  { %500 = vsyncadd [#allocation4], 4294966784 }
   0xd   :  { %501 = dma.done.wait [#allocation7], 16416  }
   0xe   :  { %502 = vsyncadd [#allocation7], 4294950880  ;;  %v164_v0 = vld [vmem:[#allocation6 + $0x2f0] sm:$0xff]  ;;  %v162_v1 = vld [vmem:[#allocation6 + $0x2e0] sm:$0xff]  ;;  %s510_s0 = smov [#allocation9]   ;;  %s386_s30 = sshll.u32 %s546_s3, 4  ;;  %s387_s30 = int_to_ptr.hbm [resolvable:$true] %s386_s30 }
   0xf   :  { %v196_v2 = vld [vmem:[#allocation6 + $0x3f0] sm:$0xff]  ;;  %238 = vmatpush.msra.mxu2 %v164_v0  ;;  %v194_v6 = vld [vmem:[#allocation6 + $0x3e0] sm:$0xff]  ;;  %v165_v62 = vld [vmem:[#allocation6 + $0x2f8] sm:$0xff]  ;;  %s384_s2 = sshll.u32 %s510_s0, 4  ;;  %s385_s2 = int_to_ptr.vmem [resolvable:$true] %s384_s2 }
  0x10   :  { %258 = vmatpush.msra.mxu3 %v196_v2  ;;  %v100_v3 = vld [vmem:[#allocation6 + $0xf0] sm:$0xff]  ;;  %v98_v7 = vld [vmem:[#allocation6 + $0xe0] sm:$0xff]  ;;  %v197_v63 = vld [vmem:[#allocation6 + $0x3f8] sm:$0xff] }
  0x11   :  { %v132_v4 = vld [vmem:[#allocation6 + $0x1f0] sm:$0xff]  ;;  %198 = vmatpush.msra.mxu0 %v100_v3  ;;  %v130_v8 = vld [vmem:[#allocation6 + $0x1e0] sm:$0xff]  ;;  %239 = vmatpush.msra.mxu2 %v162_v1  ;;  %v163_v2 = vld [vmem:[#allocation6 + $0x2e8] sm:$0xff] }
  0x12   :  { %v160_v5 = vld [vmem:[#allocation6 + $0x2d0] sm:$0xff]  ;;  %218 = vmatpush.msra.mxu1 %v132_v4  ;;  %259 = vmatpush.msra.mxu3 %v194_v6  ;;  %v158_v11 = vld [vmem:[#allocation6 + $0x2c0] sm:$0xff]  ;;  %v101_v3 = vld [vmem:[#allocation6 + $0xf8] sm:$0xff] }
  0x13   :  { %v192_v9 = vld [vmem:[#allocation6 + $0x3d0] sm:$0xff]  ;;  %199 = vmatpush.msra.mxu0 %v98_v7  ;;  %v190_v13 = vld [vmem:[#allocation6 + $0x3c0] sm:$0xff]  ;;  %240 = vmatpush.msra.mxu2 %v160_v5  ;;  %v133_v4 = vld [vmem:[#allocation6 + $0x1f8] sm:$0xff] }
  0x14   :  { %v96_v10 = vld [vmem:[#allocation6 + $0xd0] sm:$0xff]  ;;  %219 = vmatpush.msra.mxu1 %v130_v8  ;;  %260 = vmatpush.msra.mxu3 %v192_v9  ;;  %v94_v14 = vld [vmem:[#allocation6 + $0xc0] sm:$0xff]  ;;  %v195_v5 = vld [vmem:[#allocation6 + $0x3e8] sm:$0xff] }
  0x15   :  { %v128_v12 = vld [vmem:[#allocation6 + $0x1d0] sm:$0xff]  ;;  %v126_v15 = vld [vmem:[#allocation6 + $0x1c0] sm:$0xff]  ;;  %200 = vmatpush.msra.mxu0 %v96_v10  ;;  %241 = vmatpush.msra.mxu2 %v158_v11  ;;  %v161_v6 = vld [vmem:[#allocation6 + $0x2d8] sm:$0xff] }
  0x16   :  { %220 = vmatpush.msra.mxu1 %v128_v12  ;;  %v156_v16 = vld [vmem:[#allocation6 + $0x2b0] sm:$0xff]  ;;  %261 = vmatpush.msra.mxu3 %v190_v13  ;;  %v154_v20 = vld [vmem:[#allocation6 + $0x2a0] sm:$0xff]  ;;  %v99_v7 = vld [vmem:[#allocation6 + $0xe8] sm:$0xff] }
  0x17   :  { %v188_v17 = vld [vmem:[#allocation6 + $0x3b0] sm:$0xff]  ;;  %201 = vmatpush.msra.mxu0 %v94_v14  ;;  %v186_v21 = vld [vmem:[#allocation6 + $0x3a0] sm:$0xff]  ;;  %242 = vmatpush.msra.mxu2 %v156_v16  ;;  %v131_v8 = vld [vmem:[#allocation6 + $0x1e8] sm:$0xff] }
  0x18   :  { %v92_v18 = vld [vmem:[#allocation6 + $0xb0] sm:$0xff]  ;;  %221 = vmatpush.msra.mxu1 %v126_v15  ;;  %262 = vmatpush.msra.mxu3 %v188_v17  ;;  %v90_v22 = vld [vmem:[#allocation6 + $0xa0] sm:$0xff]  ;;  %v193_v9 = vld [vmem:[#allocation6 + $0x3d8] sm:$0xff] }
  0x19   :  { %v124_v19 = vld [vmem:[#allocation6 + $0x1b0] sm:$0xff]  ;;  %v122_v23 = vld [vmem:[#allocation6 + $0x1a0] sm:$0xff]  ;;  %202 = vmatpush.msra.mxu0 %v92_v18  ;;  %243 = vmatpush.msra.mxu2 %v154_v20  ;;  %v159_v10 = vld [vmem:[#allocation6 + $0x2c8] sm:$0xff] }
  0x1a   :  { %222 = vmatpush.msra.mxu1 %v124_v19  ;;  %v152_v24 = vld [vmem:[#allocation6 + $0x290] sm:$0xff]  ;;  %263 = vmatpush.msra.mxu3 %v186_v21  ;;  %v150_v28 = vld [vmem:[#allocation6 + $0x280] sm:$0xff]  ;;  %v97_v11 = vld [vmem:[#allocation6 + $0xd8] sm:$0xff] }
  0x1b   :  { %v184_v25 = vld [vmem:[#allocation6 + $0x390] sm:$0xff]  ;;  %203 = vmatpush.msra.mxu0 %v90_v22  ;;  %v182_v29 = vld [vmem:[#allocation6 + $0x380] sm:$0xff]  ;;  %244 = vmatpush.msra.mxu2 %v152_v24  ;;  %v129_v12 = vld [vmem:[#allocation6 + $0x1d8] sm:$0xff] }
  0x1c   :  { %v88_v26 = vld [vmem:[#allocation6 + $0x90] sm:$0xff]  ;;  %223 = vmatpush.msra.mxu1 %v122_v23  ;;  %264 = vmatpush.msra.mxu3 %v184_v25  ;;  %v86_v30 = vld [vmem:[#allocation6 + $0x80] sm:$0xff]  ;;  %v191_v13 = vld [vmem:[#allocation6 + $0x3c8] sm:$0xff] }
  0x1d   :  { %v120_v27 = vld [vmem:[#allocation6 + $0x190] sm:$0xff]  ;;  %v118_v31 = vld [vmem:[#allocation6 + $0x180] sm:$0xff]  ;;  %204 = vmatpush.msra.mxu0 %v88_v26  ;;  %245 = vmatpush.msra.mxu2 %v150_v28  ;;  %v157_v14 = vld [vmem:[#allocation6 + $0x2b8] sm:$0xff] }
  0x1e   :  { %224 = vmatpush.msra.mxu1 %v120_v27  ;;  %v148_v32 = vld [vmem:[#allocation6 + $0x270] sm:$0xff]  ;;  %265 = vmatpush.msra.mxu3 %v182_v29  ;;  %v146_v36 = vld [vmem:[#allocation6 + $0x260] sm:$0xff]  ;;  %v95_v15 = vld [vmem:[#allocation6 + $0xc8] sm:$0xff] }
  0x1f   :  { %v180_v33 = vld [vmem:[#allocation6 + $0x370] sm:$0xff]  ;;  %205 = vmatpush.msra.mxu0 %v86_v30  ;;  %v178_v37 = vld [vmem:[#allocation6 + $0x360] sm:$0xff]  ;;  %246 = vmatpush.msra.mxu2 %v148_v32  ;;  %v127_v16 = vld [vmem:[#allocation6 + $0x1c8] sm:$0xff] }
  0x20   :  { %v84_v34 = vld [vmem:[#allocation6 + $0x70] sm:$0xff]  ;;  %225 = vmatpush.msra.mxu1 %v118_v31  ;;  %266 = vmatpush.msra.mxu3 %v180_v33  ;;  %v82_v38 = vld [vmem:[#allocation6 + $0x60] sm:$0xff]  ;;  %v189_v17 = vld [vmem:[#allocation6 + $0x3b8] sm:$0xff] }
  0x21   :  { %v116_v35 = vld [vmem:[#allocation6 + $0x170] sm:$0xff]  ;;  %v114_v39 = vld [vmem:[#allocation6 + $0x160] sm:$0xff]  ;;  %206 = vmatpush.msra.mxu0 %v84_v34  ;;  %247 = vmatpush.msra.mxu2 %v146_v36  ;;  %v155_v18 = vld [vmem:[#allocation6 + $0x2a8] sm:$0xff] }
  0x22   :  { %226 = vmatpush.msra.mxu1 %v116_v35  ;;  %v144_v40 = vld [vmem:[#allocation6 + $0x250] sm:$0xff]  ;;  %267 = vmatpush.msra.mxu3 %v178_v37  ;;  %v142_v44 = vld [vmem:[#allocation6 + $0x240] sm:$0xff]  ;;  %v93_v19 = vld [vmem:[#allocation6 + $0xb8] sm:$0xff] }
  0x23   :  { %v176_v41 = vld [vmem:[#allocation6 + $0x350] sm:$0xff]  ;;  %207 = vmatpush.msra.mxu0 %v82_v38  ;;  %v174_v45 = vld [vmem:[#allocation6 + $0x340] sm:$0xff]  ;;  %248 = vmatpush.msra.mxu2 %v144_v40  ;;  %v125_v20 = vld [vmem:[#allocation6 + $0x1b8] sm:$0xff] }
  0x24   :  { %v80_v42 = vld [vmem:[#allocation6 + $0x50] sm:$0xff]  ;;  %227 = vmatpush.msra.mxu1 %v114_v39  ;;  %268 = vmatpush.msra.mxu3 %v176_v41  ;;  %v78_v46 = vld [vmem:[#allocation6 + $0x40] sm:$0xff]  ;;  %v187_v21 = vld [vmem:[#allocation6 + $0x3a8] sm:$0xff] }
  0x25   :  { %v112_v43 = vld [vmem:[#allocation6 + $0x150] sm:$0xff]  ;;  %v110_v47 = vld [vmem:[#allocation6 + $0x140] sm:$0xff]  ;;  %208 = vmatpush.msra.mxu0 %v80_v42  ;;  %249 = vmatpush.msra.mxu2 %v142_v44  ;;  %v153_v22 = vld [vmem:[#allocation6 + $0x298] sm:$0xff] }
  0x26   :  { %228 = vmatpush.msra.mxu1 %v112_v43  ;;  %v140_v48 = vld [vmem:[#allocation6 + $0x230] sm:$0xff]  ;;  %269 = vmatpush.msra.mxu3 %v174_v45  ;;  %v138_v52 = vld [vmem:[#allocation6 + $0x220] sm:$0xff]  ;;  %v91_v23 = vld [vmem:[#allocation6 + $0xa8] sm:$0xff] }
  0x27   :  { %v172_v49 = vld [vmem:[#allocation6 + $0x330] sm:$0xff]  ;;  %209 = vmatpush.msra.mxu0 %v78_v46  ;;  %v170_v53 = vld [vmem:[#allocation6 + $0x320] sm:$0xff]  ;;  %250 = vmatpush.msra.mxu2 %v140_v48  ;;  %v123_v24 = vld [vmem:[#allocation6 + $0x1a8] sm:$0xff] }
  0x28   :  { %v76_v50 = vld [vmem:[#allocation6 + $0x30] sm:$0xff]  ;;  %229 = vmatpush.msra.mxu1 %v110_v47  ;;  %270 = vmatpush.msra.mxu3 %v172_v49  ;;  %v74_v54 = vld [vmem:[#allocation6 + $0x20] sm:$0xff]  ;;  %v185_v25 = vld [vmem:[#allocation6 + $0x398] sm:$0xff] }
  0x29   :  { %v108_v51 = vld [vmem:[#allocation6 + $0x130] sm:$0xff]  ;;  %v106_v55 = vld [vmem:[#allocation6 + $0x120] sm:$0xff]  ;;  %210 = vmatpush.msra.mxu0 %v76_v50  ;;  %251 = vmatpush.msra.mxu2 %v138_v52  ;;  %v151_v26 = vld [vmem:[#allocation6 + $0x288] sm:$0xff] }
  0x2a   :  { %230 = vmatpush.msra.mxu1 %v108_v51  ;;  %v136_v56 = vld [vmem:[#allocation6 + $0x210] sm:$0xff]  ;;  %271 = vmatpush.msra.mxu3 %v170_v53  ;;  %v134_v60 = vld [vmem:[#allocation6 + $0x200] sm:$0xff]  ;;  %v89_v27 = vld [vmem:[#allocation6 + $0x98] sm:$0xff] }
  0x2b   :  { %v168_v57 = vld [vmem:[#allocation6 + $0x310] sm:$0xff]  ;;  %211 = vmatpush.msra.mxu0 %v74_v54  ;;  %v166_v61 = vld [vmem:[#allocation6 + $0x300] sm:$0xff]  ;;  %252 = vmatpush.msra.mxu2 %v136_v56  ;;  %v121_v28 = vld [vmem:[#allocation6 + $0x198] sm:$0xff] }
  0x2c   :  { %v72_v58 = vld [vmem:[#allocation6 + $0x10] sm:$0xff]  ;;  %231 = vmatpush.msra.mxu1 %v106_v55  ;;  %272 = vmatpush.msra.mxu3 %v168_v57  ;;  %v70_v0 = vld [vmem:[#allocation6] sm:$0xff]  ;;  %v183_v29 = vld [vmem:[#allocation6 + $0x388] sm:$0xff] }
  0x2d   :  { %v104_v59 = vld [vmem:[#allocation6 + $0x110] sm:$0xff]  ;;  %212 = vmatpush.msra.mxu0 %v72_v58  ;;  %v102_v1 = vld [vmem:[#allocation6 + $0x100] sm:$0xff]  ;;  %253 = vmatpush.msra.mxu2 %v134_v60  ;;  %v149_v30 = vld [vmem:[#allocation6 + $0x278] sm:$0xff] }
  0x2e   :  { %232 = vmatpush.msra.mxu1 %v104_v59  ;;  %273 = vmatpush.msra.mxu3 %v166_v61  ;;  %v87_v31 = vld [vmem:[#allocation6 + $0x88] sm:$0xff]  ;;  %v181_v33 = vld [vmem:[#allocation6 + $0x378] sm:$0xff]  ;;  %v68_v44 = vld [vmem:[#allocation3 + $0x10] sm:$0xff] }
  0x2f   :  { %318 = vmatpush.msrb.mxu2 %v165_v62  ;;  %213 = vmatpush.msra.mxu0 %v70_v0  ;;  %v119_v32 = vld [vmem:[#allocation6 + $0x188] sm:$0xff]  ;;  %v85_v35 = vld [vmem:[#allocation6 + $0x78] sm:$0xff]  ;;  %v66_v53 = vld [vmem:[#allocation3] sm:$0xff] }
  0x30   :  { %338 = vmatpush.msrb.mxu3 %v197_v63  ;;  %233 = vmatpush.msra.mxu1 %v102_v1  ;;  %v147_v34 = vld [vmem:[#allocation6 + $0x268] sm:$0xff]  ;;  %v117_v36 = vld [vmem:[#allocation6 + $0x178] sm:$0xff] }
  0x31   :  { %319 = vmatpush.msrb.mxu2 %v163_v2  ;;  %278 = vmatpush.msrb.mxu0 %v101_v3  ;;  %v179_v37 = vld [vmem:[#allocation6 + $0x368] sm:$0xff]  ;;  %v145_v38 = vld [vmem:[#allocation6 + $0x258] sm:$0xff] }
  0x32   :  { %298 = vmatpush.msrb.mxu1 %v133_v4  ;;  %339 = vmatpush.msrb.mxu3 %v195_v5  ;;  %v83_v39 = vld [vmem:[#allocation6 + $0x68] sm:$0xff]  ;;  %v177_v41 = vld [vmem:[#allocation6 + $0x358] sm:$0xff] }
  0x33   :  { %320 = vmatpush.msrb.mxu2 %v161_v6  ;;  %279 = vmatpush.msrb.mxu0 %v99_v7  ;;  %v115_v40 = vld [vmem:[#allocation6 + $0x168] sm:$0xff]  ;;  %v81_v43 = vld [vmem:[#allocation6 + $0x58] sm:$0xff]  ;;  %v367_v6 = vld [vmem:[#allocation8] sm:$0x3] }
  0x34   :  { %299 = vmatpush.msrb.mxu1 %v131_v8  ;;  %340 = vmatpush.msrb.mxu3 %v193_v9  ;;  %v143_v42 = vld [vmem:[#allocation6 + $0x248] sm:$0xff]  ;;  %v113_v45 = vld [vmem:[#allocation6 + $0x158] sm:$0xff] }
  0x35   :  { %321 = vmatpush.msrb.mxu2 %v159_v10  ;;  %280 = vmatpush.msrb.mxu0 %v97_v11  ;;  %v141_v46 = vld [vmem:[#allocation6 + $0x238] sm:$0xff]  ;;  %v175_v47 = vld [vmem:[#allocation6 + $0x348] sm:$0xff]  ;;  %v369_v11 = vperm.slane %v367_v6, 0 }
  0x36   :  { %300 = vmatpush.msrb.mxu1 %v129_v12  ;;  %341 = vmatpush.msrb.mxu3 %v191_v13  ;;  %v69_v48 = vld [vmem:[#allocation3 + $0x18] sm:$0xff]  ;;  %v79_v49 = vld [vmem:[#allocation6 + $0x48] sm:$0xff] }
  0x37   :  { %322 = vmatpush.msrb.mxu2 %v157_v14  ;;  %281 = vmatpush.msrb.mxu0 %v95_v15  ;;  %v111_v50 = vld [vmem:[#allocation6 + $0x148] sm:$0xff]  ;;  %v173_v52 = vld [vmem:[#allocation6 + $0x338] sm:$0xff] }
  0x38   :  { %301 = vmatpush.msrb.mxu1 %v127_v16  ;;  %342 = vmatpush.msrb.mxu3 %v189_v17  ;;  %v139_v51 = vld [vmem:[#allocation6 + $0x228] sm:$0xff]  ;;  %v77_v55 = vld [vmem:[#allocation6 + $0x38] sm:$0xff] }
  0x39   :  { %323 = vmatpush.msrb.mxu2 %v155_v18  ;;  %282 = vmatpush.msrb.mxu0 %v93_v19  ;;  %v67_v54 = vld [vmem:[#allocation3 + $0x8] sm:$0xff]  ;;  %v109_v56 = vld [vmem:[#allocation6 + $0x138] sm:$0xff] }
  0x3a   :  { %302 = vmatpush.msrb.mxu1 %v125_v20  ;;  %343 = vmatpush.msrb.mxu3 %v187_v21  ;;  %v137_v57 = vld [vmem:[#allocation6 + $0x218] sm:$0xff]  ;;  %v171_v58 = vld [vmem:[#allocation6 + $0x328] sm:$0xff]  ;;  %v370_v20 = vperm.slane %v367_v6, 1 }
  0x3b   :  { %324 = vmatpush.msrb.mxu2 %v153_v22  ;;  %283 = vmatpush.msrb.mxu0 %v91_v23  ;;  %v75_v59 = vld [vmem:[#allocation6 + $0x28] sm:$0xff]  ;;  %v169_v62 = vld [vmem:[#allocation6 + $0x318] sm:$0xff] }
  0x3c   :  { %303 = vmatpush.msrb.mxu1 %v123_v24  ;;  %344 = vmatpush.msrb.mxu3 %v185_v25  ;;  %v107_v60 = vld [vmem:[#allocation6 + $0x128] sm:$0xff]  ;;  %v73_v63 = vld [vmem:[#allocation6 + $0x18] sm:$0xff] }
  0x3d   :  { %325 = vmatpush.msrb.mxu2 %v151_v26  ;;  %284 = vmatpush.msrb.mxu0 %v89_v27  ;;  %v135_v61 = vld [vmem:[#allocation6 + $0x208] sm:$0xff]  ;;  %v105_v0 = vld [vmem:[#allocation6 + $0x118] sm:$0xff] }
  0x3e   :  { %304 = vmatpush.msrb.mxu1 %v121_v28  ;;  %345 = vmatpush.msrb.mxu3 %v183_v29  ;;  %v167_v1 = vld [vmem:[#allocation6 + $0x308] sm:$0xff] }
  0x3f   :  { %326 = vmatpush.msrb.mxu2 %v149_v30  ;;  %285 = vmatpush.msrb.mxu0 %v87_v31  ;;  %v71_v2 = vld [vmem:[#allocation6 + $0x8] sm:$0xff] }
  0x40   :  { %305 = vmatpush.msrb.mxu1 %v119_v32  ;;  %346 = vmatpush.msrb.mxu3 %v181_v33  ;;  %v103_v3 = vld [vmem:[#allocation6 + $0x108] sm:$0xff] }
  0x41   :  { %327 = vmatpush.msrb.mxu2 %v147_v34  ;;  %286 = vmatpush.msrb.mxu0 %v85_v35 }
  0x42   :  { %306 = vmatpush.msrb.mxu1 %v117_v36  ;;  %347 = vmatpush.msrb.mxu3 %v179_v37 }
  0x43   :  { %328 = vmatpush.msrb.mxu2 %v145_v38  ;;  %287 = vmatpush.msrb.mxu0 %v83_v39 }
  0x44   :  { %307 = vmatpush.msrb.mxu1 %v115_v40  ;;  %348 = vmatpush.msrb.mxu3 %v177_v41 }
  0x45   :  { %329 = vmatpush.msrb.mxu2 %v143_v42  ;;  %288 = vmatpush.msrb.mxu0 %v81_v43 }
  0x46   :  { %254 = vmatmul.f32.vlgmr.msra.gmra.mxu2 %v68_v44  ;;  %308 = vmatpush.msrb.mxu1 %v113_v45 }
  0x47   :  { %330 = vmatpush.msrb.mxu2 %v141_v46  ;;  %349 = vmatpush.msrb.mxu3 %v175_v47 }
  0x48   :  { %274 = vmatmul.f32.vlgmr.msra.gmra.mxu3 %v69_v48  ;;  %289 = vmatpush.msrb.mxu0 %v79_v49 }
  0x49   :  { %309 = vmatpush.msrb.mxu1 %v111_v50  ;;  %331 = vmatpush.msrb.mxu2 %v139_v51 }
  0x4a   :  { %350 = vmatpush.msrb.mxu3 %v173_v52  ;;  %214 = vmatmul.f32.vlgmr.msra.gmra.mxu0 %v66_v53 }
  0x4b   :  { %234 = vmatmul.f32.vlgmr.msra.gmra.mxu1 %v67_v54  ;;  %290 = vmatpush.msrb.mxu0 %v77_v55 }
  0x4c   :  { %310 = vmatpush.msrb.mxu1 %v109_v56  ;;  %332 = vmatpush.msrb.mxu2 %v137_v57 }
  0x4d   :  { %351 = vmatpush.msrb.mxu3 %v171_v58  ;;  %291 = vmatpush.msrb.mxu0 %v75_v59 }
  0x4e   :  { %311 = vmatpush.msrb.mxu1 %v107_v60  ;;  %333 = vmatpush.msrb.mxu2 %v135_v61 }
  0x4f   :  { %352 = vmatpush.msrb.mxu3 %v169_v62  ;;  %334 = vmatmul.f32.vlgmr.msrb.gmra.mxu2 %v68_v44 }
  0x50   :  { %292 = vmatpush.msrb.mxu0 %v73_v63  ;;  %312 = vmatpush.msrb.mxu1 %v105_v0 }
  0x51   :  { %353 = vmatpush.msrb.mxu3 %v167_v1 }
  0x52   :  { %354 = vmatmul.f32.vlgmr.msrb.gmra.mxu3 %v69_v48  ;;  %293 = vmatpush.msrb.mxu0 %v71_v2 }
  0x53   :  { %313 = vmatpush.msrb.mxu1 %v103_v3  ;;  %294 = vmatmul.f32.vlgmr.msrb.gmra.mxu0 %v66_v53 }
  0x54   :  { %314 = vmatmul.f32.vlgmr.msrb.gmra.mxu1 %v67_v54 }
  0xc7   :  { %v215_v4 = vpop.f32.mrf.mxu0 }
  0xc8   :  { %v235_v5 = vpop.f32.mrf.mxu1 }
  0xc9   :  { %v236_v7 = vadd.f32 %v235_v5, %v215_v4  ;;  %v255_v8 = vpop.f32.mrf.mxu2 }
  0xcb   :  { %v256_v9 = vadd.f32 %v255_v8, %v236_v7  ;;  %v275_v10 = vpop.f32.mrf.mxu3 }
  0xcd   :  { %v276_v12 = vadd.f32 %v275_v10, %v256_v9 }
  0xcf   :  { %v373_v13 = vadd.f32 %v369_v11, %v276_v12 }
  0xd0   :  { %v295_v14 = vpop.f32.mrf.mxu0 }
  0xd1   :  { %v375_v15 = vmax.f32 %v373_v13, 0.0  ;;  %v315_v16 = vpop.f32.mrf.mxu1 }
  0xd2   :  { %v316_v17 = vadd.f32 %v315_v16, %v295_v14  ;;  %v335_v18 = vpop.f32.mrf.mxu2 }
  0xd3   :  { %377 = vst [vmem:[#allocation9] sm:$0xff] %v375_v15 }
  0xd4   :  { %v336_v19 = vadd.f32 %v335_v18, %v316_v17 }
  0xd5   :  { %v355_v21 = vpop.f32.mrf.mxu3 }
  0xd6   :  { %v356_v22 = vadd.f32 %v355_v21, %v336_v19 }
  0xd8   :  { %v374_v23 = vadd.f32 %v370_v20, %v356_v22 }
  0xda   :  { %v376_v24 = vmax.f32 %v374_v23, 0.0 }
  0xdc   :  { %378 = vst [vmem:[#allocation9 + $0x8] sm:$0xff] %v376_v24 }
  0xdd   :  { %389 = dma.vmem_to_hbm [thread:$0]  %s385_s2, 256, %s387_s30, [#allocation5]  }
  0xde   :  { %503 = dma.done.wait [#allocation5], 256  }
  0xdf   :  { %504 = vsyncadd [#allocation5], 4294967040 }
  0xe0   :  { %394 = vsyncpa [#allocation4], 1 }
  0xe1   :  { %395 = vsyncpa [#allocation7], 1 }
  0xe2   :  { %396 = vsyncpa [#allocation5], 1 }

</bundles_post_ra>
